<compile_context>
chip_gen: v6e
topology: v6e:2x2x1
jax: 0.10.0
libtpu: 0.0.40
codegen_flags: <defaults>
</compile_context>

<pallas_src>
import functools

import jax
import jax.numpy as jnp
from jax.experimental import pallas as pl
from jax.experimental.pallas import tpu as pltpu

_LANE = 128


# ----------------------------------------------------------------------------
# Small helpers
# ----------------------------------------------------------------------------

def _round_up(x, m):
    return (x + m - 1) // m * m


@functools.lru_cache(maxsize=1)
def _tpu_config():
    """Generation-aware VMEM budget and tile caps."""
    try:
        cap = int(getattr(pltpu.get_tpu_info(), "vmem_capacity_bytes", 64 << 20))
    except Exception:  # interpret mode / older jax / no TPU visible at trace
        cap = 64 << 20
    if cap >= (96 << 20):            # v5e / v6e: 128 MiB physical VMEM
        return {"vmem_limit": 64 << 20, "tm_cap": 2048}
    return {"vmem_limit": 32 << 20, "tm_cap": 1024}   # v7x-class: 64 MiB physical


def _pick_m_tile(m_dim, cap, fits=None):
    """Largest multiple of 128 dividing m_dim, <= cap, satisfying `fits`,
    keeping >= 2 M tiles whenever m_dim >= 256 (so v7x's 2 TCs both work)."""
    assert m_dim % _LANE == 0
    cap = min(cap, m_dim)
    if m_dim >= 2 * _LANE:
        cap = min(cap, (m_dim // 2) // _LANE * _LANE)
    cands = [t for t in range(_LANE, cap + 1, _LANE) if m_dim % t == 0]
    for t in reversed(cands):
        if fits is None or fits(t):
            return t
    return cands[0]


def _pick_co_tile(c_out):
    if c_out <= 256:
        return c_out
    for t in (256, 128, 64, 32, 16, 8):
        if c_out % t == 0:
            return t
    return c_out


def _apply_act(y, activation):
    if activation == "relu":
        return jnp.maximum(y, 0.0)
    if activation == "sigmoid":
        # numerically stable sigmoid: 0.5 * (1 + tanh(y/2))  (EUP tanh)
        return 0.5 * (jnp.tanh(0.5 * y) + 1.0)
    return y


def _pad_lanes(x2d):
    m = x2d.shape[-1]
    pad = (-m) % _LANE
    if pad:
        x2d = jnp.pad(x2d, ((0, 0), (0, pad)))
    return x2d, m


def _nchw_to_cm(x):
    n, c, h, w = x.shape
    return x.transpose(1, 0, 2, 3).reshape(c, n * h * w), n, h, w


def _cm_to_nchw(x_cm, n, h, w):
    c = x_cm.shape[0]
    return x_cm.reshape(c, n, h, w).transpose(1, 0, 2, 3)


# ----------------------------------------------------------------------------
# Pallas kernels
# ----------------------------------------------------------------------------

def _make_conv_kernel(tap_offsets, c_in, window, activation):
    """Fused im2col conv on the flat padded-frame layout.

    For output flat position g (over the padded grid) and tap t=(i,j):
      y[co, g] = b[co] + sum_t W_t[co, :] @ x_flat[:, g + off_t]
    Taps are accumulated with an unrolled loop of small MXU dots on shifted
    slices of one lane-aligned window read from the resident X slab.
    """
    n_taps = len(tap_offsets)

    def kernel(x_ref, w_ref, b_ref, o_ref):
        tco, tm = o_ref.shape
        m0 = pl.multiple_of(pl.program_id(1) * tm, _LANE)
        xw = x_ref[:, pl.ds(m0, window)]                 # (C_in, tm + halo) bf16
        wfull = w_ref[...]                               # (tco, k*k*C_in)  bf16
        # bias folded into the accumulator init (hidden under the first dot)
        acc = jnp.broadcast_to(b_ref[...], (tco, tm)).astype(jnp.float32)
        for t in range(n_taps):
            off = tap_offsets[t]
            xs = xw[:, off:off + tm]                     # static shift  (C_in, tm)
            wt = wfull[:, t * c_in:(t + 1) * c_in]       # (tco, C_in)
            acc = acc + jnp.dot(wt, xs, preferred_element_type=jnp.float32)
        o_ref[...] = _apply_act(acc, activation).astype(o_ref.dtype)

    return kernel


def conv2d_cm_fused(x_flat, w_mat, b_mat, *, tap_offsets, m_pad, halo,
                    activation, out_dtype):
    """y_full[C_out, m_pad] = act(conv(x) + b) on the flat padded-frame layout.

    x_flat : (C_in, m_pad + halo) bf16   -- resident in VMEM, DMA'd once
    w_mat  : (C_out, k*k*C_in)    bf16   -- tap-major columns
    b_mat  : (C_out, 1)           f32
    """
    cfg = _tpu_config()
    c_in, l_total = x_flat.shape
    c_out, kk_cin = w_mat.shape
    assert l_total == m_pad + halo and b_mat.shape == (c_out, 1)
    tco = _pick_co_tile(c_out)
    out_bytes = jnp.dtype(out_dtype).itemsize

    def fits(t):
        return (2 * c_in * l_total * 2          # resident X (worst-case 2 bufs)
                + 2 * tco * kk_cin * 2          # resident weights
                + 2 * tco * t * out_bytes       # output double buffer
                + tco * t * 4                   # f32 accumulator temporaries
                + 2 * c_in * (t + halo) * 2     # window + tap slices
                ) <= cfg["vmem_limit"] * 3 // 4

    tm = _pick_m_tile(m_pad, cfg["tm_cap"], fits)
    grid = (c_out // tco, m_pad // tm)

    return pl.pallas_call(
        _make_conv_kernel(tuple(tap_offsets), c_in, tm + halo, activation),
        grid=grid,
        in_specs=[
            # flat activation slab: constant index_map -> fetched once, resident
            pl.BlockSpec((c_in, l_total), lambda co, m: (0, 0)),
            # weights / bias: resident across the whole inner M sweep
            pl.BlockSpec((tco, kk_cin), lambda co, m: (co, 0)),
            pl.BlockSpec((tco, 1), lambda co, m: (co, 0)),
        ],
        out_specs=pl.BlockSpec((tco, tm), lambda co, m: (co, m)),
        out_shape=jax.ShapeDtypeStruct((c_out, m_pad), out_dtype),
        compiler_params=pltpu.CompilerParams(
            dimension_semantics=("parallel", "parallel"),
            vmem_limit_bytes=cfg["vmem_limit"]),
    )(x_flat, w_mat, b_mat)


def _make_matmul_kernel(activation):
    # full-K single-shot matmul: no reduction grid axis, no scratch
    def kernel(w_ref, x_ref, b_ref, o_ref):
        acc = jnp.dot(w_ref[...], x_ref[...], preferred_element_type=jnp.float32)
        acc = acc + b_ref[...]
        o_ref[...] = _apply_act(acc, activation).astype(o_ref.dtype)
    return kernel


def matmul_bias_act(w_mat, x_cols, b_mat, *, activation, out_dtype):
    """o[C_out, M] = act(w[C_out, K] @ x[K, M] + b).  Full-K resident weights;
    C_out and M are parallel grid axes (fallback path for huge activations)."""
    cfg = _tpu_config()
    c_out, k_dim = w_mat.shape
    k2, m_dim = x_cols.shape
    assert k_dim == k2 and m_dim % _LANE == 0 and b_mat.shape == (c_out, 1)
    tco = _pick_co_tile(c_out)
    out_bytes = jnp.dtype(out_dtype).itemsize

    def fits(t):
        return (2 * k_dim * t * 2 + 2 * tco * k_dim * 2
                + 2 * tco * t * out_bytes + tco * t * 4) <= cfg["vmem_limit"] * 3 // 4

    tm = _pick_m_tile(m_dim, cfg["tm_cap"], fits)
    return pl.pallas_call(
        _make_matmul_kernel(activation),
        grid=(c_out // tco, m_dim // tm),
        in_specs=[
            pl.BlockSpec((tco, k_dim), lambda co, m: (co, 0)),
            pl.BlockSpec((k_dim, tm), lambda co, m: (0, m)),
            pl.BlockSpec((tco, 1), lambda co, m: (co, 0)),
        ],
        out_specs=pl.BlockSpec((tco, tm), lambda co, m: (co, m)),
        out_shape=jax.ShapeDtypeStruct((c_out, m_dim), out_dtype),
        compiler_params=pltpu.CompilerParams(
            dimension_semantics=("parallel", "parallel"),
            vmem_limit_bytes=cfg["vmem_limit"]),
    )(w_mat, x_cols, b_mat)


def _make_eltwise_kernel(activation):
    def kernel(x_ref, o_ref):
        y = x_ref[...].astype(jnp.float32)
        o_ref[...] = _apply_act(y, activation).astype(o_ref.dtype)
    return kernel


def eltwise_act(x2d, activation):
    """Tiled, lane-dense elementwise activation on a 2D (rows, M) view."""
    cfg = _tpu_config()
    rows, m_dim = x2d.shape
    assert m_dim % _LANE == 0
    nbytes = max(x2d.dtype.itemsize, 4)

    def fits(t):
        return 4 * rows * t * nbytes <= cfg["vmem_limit"] * 3 // 4

    tm = _pick_m_tile(m_dim, cfg["tm_cap"], fits)
    return pl.pallas_call(
        _make_eltwise_kernel(activation),
        grid=(m_dim // tm,),
        in_specs=[pl.BlockSpec((rows, tm), lambda m: (0, m))],
        out_specs=pl.BlockSpec((rows, tm), lambda m: (0, m)),
        out_shape=jax.ShapeDtypeStruct((rows, m_dim), x2d.dtype),
        compiler_params=pltpu.CompilerParams(
            dimension_semantics=("parallel",),
            vmem_limit_bytes=cfg["vmem_limit"]),
    )(x2d)


# ----------------------------------------------------------------------------
# Framework: Module / concrete layers / Sequential (forward semantics mirror
# the PyTorch reference; backward/zero_grad training plumbing is not ported)
# ----------------------------------------------------------------------------

class Module:
    def __init__(self):
        self.input = None
        self.output = None

    def forward(self, *inputs):
        raise NotImplementedError

    def backward(self, *grad_wrt_output):
        # TODO(synk): training-only backward plumbing is not ported.
        raise NotImplementedError

    def zero_grad(self):
        pass

    def set_params(self, val):
        pass

    def param(self):
        return []


class Conv2d(Module):
    """2D convolution, stride 1, symmetric zero padding (PyTorch semantics)."""

    def __init__(self, in_channels, out_channels, kernel_size=3, padding=1,
                 key=None):
        super().__init__()
        self.cin, self.cout = in_channels, out_channels
        self.k, self.pad = kernel_size, padding
        key = jax.random.PRNGKey(0) if key is None else key
        kw_key, kb_key = jax.random.split(key)
        fan_in = in_channels * kernel_size * kernel_size
        bound = fan_in ** -0.5
        # PyTorch weight layout (C_out, C_in, kH, kW), uniform(-bound, bound)
        self.weight = jax.random.uniform(
            kw_key, (out_channels, in_channels, kernel_size, kernel_size),
            jnp.float32, -bound, bound)
        self.bias = jax.random.uniform(
            kb_key, (out_channels,), jnp.float32, -bound, bound)

    def _forward_cm(self, x_cm, n, h, w, activation="none",
                    out_dtype=jnp.float32):
        """(C_in, N*H*W) -> (C_out, N*Ho*Wo), stride-1 conv (+ fused act)."""
        k, pad = self.k, self.pad
        h_out = h + 2 * pad - k + 1
        w_out = w + 2 * pad - k + 1
        assert h_out > 0 and w_out > 0, "invalid kernel_size/padding for input"
        h_pad, w_pad = h + 2 * pad, w + 2 * pad
        m_frames = n * h_pad * w_pad
        m_pad = _round_up(m_frames, _LANE)
        off_max = (k - 1) * (w_pad + 1)
        halo = _round_up(off_max, _LANE) if off_max else 0
        l_total = m_pad + halo
        cfg = _tpu_config()
        b_mat = self.bias.reshape(self.cout, 1).astype(jnp.float32)

        # ---- primary: in-kernel im2col on a resident flat slab --------------
        if 2 * self.cin * l_total * 2 <= cfg["vmem_limit"] // 4:
            x4 = x_cm.astype(jnp.bfloat16).reshape(self.cin, n, h, w)
            xp = jnp.pad(x4, ((0, 0), (0, 0), (pad, pad), (pad, pad)))
            x_flat = jnp.pad(xp.reshape(self.cin, m_frames),
                             ((0, 0), (0, l_total - m_frames)))
            # tap-major columns: w_mat[:, t*C_in:(t+1)*C_in] == W[:, :, i, j]
            w_mat = self.weight.transpose(0, 2, 3, 1).reshape(
                self.cout, k * k * self.cin).astype(jnp.bfloat16)
            offs = tuple(i * w_pad + j for i in range(k) for j in range(k))
            y_full = conv2d_cm_fused(
                x_flat, w_mat, b_mat, tap_offsets=offs, m_pad=m_pad, halo=halo,
                activation=activation, out_dtype=out_dtype)
            # keep only the valid output positions of the padded frame
            y = y_full[:, :m_frames].reshape(self.cout, n, h_pad, w_pad)
            y = y[:, :, :h_out, :w_out].reshape(self.cout, n * h_out * w_out)
            return y, h_out, w_out

        # ---- fallback: bf16 XLA im2col (pad fused) + full-K tiled matmul ----
        x4 = x_cm.astype(jnp.bfloat16).reshape(self.cin, n, h, w)
        xp = jnp.pad(x4, ((0, 0), (0, 0), (pad, pad), (pad, pad)))
        taps = [xp[:, :, i:i + h_out, j:j + w_out]
                for i in range(k) for j in range(k)]
        cols = jnp.stack(taps, axis=1).reshape(self.cin * k * k,
                                               n * h_out * w_out)
        cols, m_true = _pad_lanes(cols)
        w_mat = self.weight.reshape(self.cout, -1).astype(jnp.bfloat16)
        y = matmul_bias_act(w_mat, cols, b_mat,
                            activation=activation, out_dtype=out_dtype)
        return y[:, :m_true], h_out, w_out

    def forward(self, x):
        self.input = x
        x_cm, n, h, w = _nchw_to_cm(x)
        y_cm, h_out, w_out = self._forward_cm(x_cm, n, h, w,
                                              activation="none",
                                              out_dtype=jnp.float32)
        self.output = _cm_to_nchw(y_cm, n, h_out, w_out)
        return self.output

    def param(self):
        return [self.weight, self.bias]


class _Activation(Module):
    _act = None

    def _forward_cm(self, x_cm, n, h, w):
        xp, m_true = _pad_lanes(x_cm)
        return eltwise_act(xp, self._act)[:, :m_true], h, w

    def forward(self, x):
        self.input = x
        n, c, h, w = x.shape
        x2, m_true = _pad_lanes(x.reshape(n * c, h * w))
        y = eltwise_act(x2, self._act)[:, :m_true]
        self.output = y.reshape(n, c, h, w)
        return self.output


class ReLU(_Activation):
    _act = "relu"


class Sigmoid(_Activation):
    _act = "sigmoid"


class Sequential(Module):
    """Chains modules; forward matches the PyTorch reference container.

    Fast path: keeps activations in a channels-first-flat, lane-dense
    (C, N*H*W) layout across the whole chain (layout converted only at the
    boundaries), fuses Conv2d + ReLU/Sigmoid pairs into a single Pallas conv
    kernel with an activation epilogue, and emits bf16 intermediates (f32 only
    for the final compute op).  Output matches calling each module's forward()
    in sequence (up to bf16 intermediate rounding).
    """

    def __init__(self, *modules):
        super().__init__()
        self.modules = modules
        self.params = []

    def zero_grad(self):
        for module in self.modules:
            module.zero_grad()

    def forward(self, input):
        self.input = input
        if input.ndim != 4:
            out = input
            for module in self.modules:
                out = module.forward(out)
            self.output = out
            return out

        x_cm, n, h, w = _nchw_to_cm(input)
        mods = list(self.modules)
        i = 0
        while i < len(mods):
            module = mods[i]
            if isinstance(module, Conv2d):
                act = "none"
                nxt = i + 1
                if nxt < len(mods) and isinstance(mods[nxt], _Activation):
                    act = mods[nxt]._act            # fuse activation epilogue
                    nxt += 1
                # bf16 intermediates; last compute op of the chain emits f32
                out_dtype = jnp.float32 if nxt >= len(mods) else jnp.bfloat16
                x_cm, h, w = module._forward_cm(x_cm, n, h, w,
                                                activation=act,
                                                out_dtype=out_dtype)
                i = nxt
            elif isinstance(module, _Activation):
                x_cm, h, w = module._forward_cm(x_cm, n, h, w)
                i += 1
            else:
                # Unknown module: round-trip through the NCHW interface.
                x_nchw = module.forward(_cm_to_nchw(x_cm, n, h, w))
                x_cm, n, h, w = _nchw_to_cm(x_nchw)
                i += 1

        self.output = _cm_to_nchw(x_cm.astype(jnp.float32), n, h, w)
        return self.output

    # TODO(synk): backward() of the reference container is training-only
    # plumbing (reverse chaining of per-module backward); forward-only here.

    def param(self):
        self.params = []
        for module in self.modules:
            self.params.extend(module.param())
        return self.params


# ----------------------------------------------------------------------------
# Demo
# ----------------------------------------------------------------------------

if __name__ == "__main__":
    key = jax.random.PRNGKey(0)
    k_x, k_c1, k_c2 = jax.random.split(key, 3)

    x = jax.random.normal(k_x, (2, 4, 16, 16), jnp.float32)   # NCHW

    net = Sequential(
        Conv2d(4, 8, kernel_size=3, padding=1, key=k_c1),
        ReLU(),
        Conv2d(8, 4, kernel_size=3, padding=1, key=k_c2),
        Sigmoid(),
    )

    y = net.forward(x)
    jax.block_until_ready(y)
    assert y.shape == (2, 4, 16, 16)
    assert bool(jnp.all(jnp.isfinite(y)))

    # Plain-JAX f32 reference (bf16 intermediates give small deviations).
    def _ref_conv(xx, ww, bb, pad):
        yy = jax.lax.conv_general_dilated(
            xx, ww, (1, 1), [(pad, pad), (pad, pad)],
            dimension_numbers=("NCHW", "OIHW", "NCHW"))
        return yy + bb.reshape(1, -1, 1, 1)

    c1, _, c2, _ = net.modules
    r = _ref_conv(x, c1.weight, c1.bias, c1.pad)
    r = jnp.maximum(r, 0.0)
    r = _ref_conv(r, c2.weight, c2.bias, c2.pad)
    r = jax.nn.sigmoid(r)
    max_err = float(jnp.max(jnp.abs(y - r)))
    assert max_err < 5e-2, f"max abs error vs reference: {max_err}"

    # Also exercise the standalone module paths (conv kernel + eltwise kernel).
    y1 = net.modules[0].forward(x)
    jax.block_until_ready(y1)
    assert y1.shape == (2, 8, 16, 16)
    r1 = _ref_conv(x, c1.weight, c1.bias, c1.pad)
    assert float(jnp.max(jnp.abs(y1 - r1))) < 5e-2

    y2 = net.modules[1].forward(y1)
    jax.block_until_ready(y2)
    assert y2.shape == (2, 8, 16, 16)
    assert bool(jnp.all(y2 >= 0))

    print("KERNEL_OK")
</pallas_src>

<mosaic_0001>
module attributes {stable_mosaic.version = 11 : i64} {
  func.func @kernel(%arg0: i32, %arg1: i32, %arg2: memref<4x896xbf16, #tpu.memory_space<vmem>>, %arg3: memref<8x36xbf16, #tpu.memory_space<vmem>>, %arg4: memref<8x1xf32, #tpu.memory_space<vmem>>, %arg5: memref<8x384xbf16, #tpu.memory_space<vmem>>) attributes {dimension_semantics = [#tpu.dimension_semantics<parallel>, #tpu.dimension_semantics<parallel>], iteration_bounds = array<i64: 1, 2>, scalar_prefetch = 0 : i64, scratch_operands = 0 : i64, tpu.core_type = #tpu.core_type<tc>, window_params = [{pipeline_mode = #tpu.pipeline_mode<synchronous>, transform_indices = @transform_0, window_bounds = array<i64: 4, 896>}, {transform_indices = @transform_1, window_bounds = array<i64: 8, 36>}, {transform_indices = @transform_2, window_bounds = array<i64: 8, 1>}, {transform_indices = @transform_3, window_bounds = array<i64: 8, 384>}]} {
    %c384_i32 = arith.constant 384 : i32
    %0 = arith.muli %arg1, %c384_i32 : i32
    %1 = tpu.assume_multiple %0, 128 : i32
    %c0 = arith.constant 0 : index
    %2 = arith.index_cast %1 : i32 to index
    %3 = vector.load %arg2[%c0, %2] : memref<4x896xbf16, #tpu.memory_space<vmem>>, vector<4x512xbf16>
    %c0_0 = arith.constant 0 : index
    %c0_1 = arith.constant 0 : index
    %4 = vector.load %arg3[%c0_0, %c0_1] : memref<8x36xbf16, #tpu.memory_space<vmem>>, vector<8x36xbf16>
    %c0_2 = arith.constant 0 : index
    %c0_3 = arith.constant 0 : index
    %5 = vector.load %arg4[%c0_2, %c0_3] : memref<8x1xf32, #tpu.memory_space<vmem>>, vector<8x1xf32>
    %6 = vector.shape_cast %5 : vector<8x1xf32> to vector<8x1xf32>
    %7 = vector.broadcast %6 : vector<8x1xf32> to vector<8x384xf32>
    %8 = vector.extract_strided_slice %3 {offsets = [0, 0], sizes = [4, 384], strides = [1, 1]} : vector<4x512xbf16> to vector<4x384xbf16>
    %9 = vector.extract_strided_slice %4 {offsets = [0, 0], sizes = [8, 4], strides = [1, 1]} : vector<8x36xbf16> to vector<8x4xbf16>
    %cst = arith.constant dense<0.000000e+00> : vector<8x384xf32>
    %10 = tpu.matmul %9, %8, %cst {dimension_numbers = #tpu.dot_dimension_numbers<[1], [0], [0], [1], [0, 0, 1, 1], [], []>} : vector<8x4xbf16>, vector<4x384xbf16>, vector<8x384xf32> -> vector<8x384xf32>
    %11 = arith.addf %7, %10 : vector<8x384xf32>
    %12 = vector.extract_strided_slice %3 {offsets = [0, 1], sizes = [4, 384], strides = [1, 1]} : vector<4x512xbf16> to vector<4x384xbf16>
    %13 = vector.extract_strided_slice %4 {offsets = [0, 4], sizes = [8, 4], strides = [1, 1]} : vector<8x36xbf16> to vector<8x4xbf16>
    %cst_4 = arith.constant dense<0.000000e+00> : vector<8x384xf32>
    %14 = tpu.matmul %13, %12, %cst_4 {dimension_numbers = #tpu.dot_dimension_numbers<[1], [0], [0], [1], [0, 0, 1, 1], [], []>} : vector<8x4xbf16>, vector<4x384xbf16>, vector<8x384xf32> -> vector<8x384xf32>
    %15 = arith.addf %11, %14 : vector<8x384xf32>
    %16 = vector.extract_strided_slice %3 {offsets = [0, 2], sizes = [4, 384], strides = [1, 1]} : vector<4x512xbf16> to vector<4x384xbf16>
    %17 = vector.extract_strided_slice %4 {offsets = [0, 8], sizes = [8, 4], strides = [1, 1]} : vector<8x36xbf16> to vector<8x4xbf16>
    %cst_5 = arith.constant dense<0.000000e+00> : vector<8x384xf32>
    %18 = tpu.matmul %17, %16, %cst_5 {dimension_numbers = #tpu.dot_dimension_numbers<[1], [0], [0], [1], [0, 0, 1, 1], [], []>} : vector<8x4xbf16>, vector<4x384xbf16>, vector<8x384xf32> -> vector<8x384xf32>
    %19 = arith.addf %15, %18 : vector<8x384xf32>
    %20 = vector.extract_strided_slice %3 {offsets = [0, 18], sizes = [4, 384], strides = [1, 1]} : vector<4x512xbf16> to vector<4x384xbf16>
    %21 = vector.extract_strided_slice %4 {offsets = [0, 12], sizes = [8, 4], strides = [1, 1]} : vector<8x36xbf16> to vector<8x4xbf16>
    %cst_6 = arith.constant dense<0.000000e+00> : vector<8x384xf32>
    %22 = tpu.matmul %21, %20, %cst_6 {dimension_numbers = #tpu.dot_dimension_numbers<[1], [0], [0], [1], [0, 0, 1, 1], [], []>} : vector<8x4xbf16>, vector<4x384xbf16>, vector<8x384xf32> -> vector<8x384xf32>
    %23 = arith.addf %19, %22 : vector<8x384xf32>
    %24 = vector.extract_strided_slice %3 {offsets = [0, 19], sizes = [4, 384], strides = [1, 1]} : vector<4x512xbf16> to vector<4x384xbf16>
    %25 = vector.extract_strided_slice %4 {offsets = [0, 16], sizes = [8, 4], strides = [1, 1]} : vector<8x36xbf16> to vector<8x4xbf16>
    %cst_7 = arith.constant dense<0.000000e+00> : vector<8x384xf32>
    %26 = tpu.matmul %25, %24, %cst_7 {dimension_numbers = #tpu.dot_dimension_numbers<[1], [0], [0], [1], [0, 0, 1, 1], [], []>} : vector<8x4xbf16>, vector<4x384xbf16>, vector<8x384xf32> -> vector<8x384xf32>
    %27 = arith.addf %23, %26 : vector<8x384xf32>
    %28 = vector.extract_strided_slice %3 {offsets = [0, 20], sizes = [4, 384], strides = [1, 1]} : vector<4x512xbf16> to vector<4x384xbf16>
    %29 = vector.extract_strided_slice %4 {offsets = [0, 20], sizes = [8, 4], strides = [1, 1]} : vector<8x36xbf16> to vector<8x4xbf16>
    %cst_8 = arith.constant dense<0.000000e+00> : vector<8x384xf32>
    %30 = tpu.matmul %29, %28, %cst_8 {dimension_numbers = #tpu.dot_dimension_numbers<[1], [0], [0], [1], [0, 0, 1, 1], [], []>} : vector<8x4xbf16>, vector<4x384xbf16>, vector<8x384xf32> -> vector<8x384xf32>
    %31 = arith.addf %27, %30 : vector<8x384xf32>
    %32 = vector.extract_strided_slice %3 {offsets = [0, 36], sizes = [4, 384], strides = [1, 1]} : vector<4x512xbf16> to vector<4x384xbf16>
    %33 = vector.extract_strided_slice %4 {offsets = [0, 24], sizes = [8, 4], strides = [1, 1]} : vector<8x36xbf16> to vector<8x4xbf16>
    %cst_9 = arith.constant dense<0.000000e+00> : vector<8x384xf32>
    %34 = tpu.matmul %33, %32, %cst_9 {dimension_numbers = #tpu.dot_dimension_numbers<[1], [0], [0], [1], [0, 0, 1, 1], [], []>} : vector<8x4xbf16>, vector<4x384xbf16>, vector<8x384xf32> -> vector<8x384xf32>
    %35 = arith.addf %31, %34 : vector<8x384xf32>
    %36 = vector.extract_strided_slice %3 {offsets = [0, 37], sizes = [4, 384], strides = [1, 1]} : vector<4x512xbf16> to vector<4x384xbf16>
    %37 = vector.extract_strided_slice %4 {offsets = [0, 28], sizes = [8, 4], strides = [1, 1]} : vector<8x36xbf16> to vector<8x4xbf16>
    %cst_10 = arith.constant dense<0.000000e+00> : vector<8x384xf32>
    %38 = tpu.matmul %37, %36, %cst_10 {dimension_numbers = #tpu.dot_dimension_numbers<[1], [0], [0], [1], [0, 0, 1, 1], [], []>} : vector<8x4xbf16>, vector<4x384xbf16>, vector<8x384xf32> -> vector<8x384xf32>
    %39 = arith.addf %35, %38 : vector<8x384xf32>
    %40 = vector.extract_strided_slice %3 {offsets = [0, 38], sizes = [4, 384], strides = [1, 1]} : vector<4x512xbf16> to vector<4x384xbf16>
    %41 = vector.extract_strided_slice %4 {offsets = [0, 32], sizes = [8, 4], strides = [1, 1]} : vector<8x36xbf16> to vector<8x4xbf16>
    %cst_11 = arith.constant dense<0.000000e+00> : vector<8x384xf32>
    %42 = tpu.matmul %41, %40, %cst_11 {dimension_numbers = #tpu.dot_dimension_numbers<[1], [0], [0], [1], [0, 0, 1, 1], [], []>} : vector<8x4xbf16>, vector<4x384xbf16>, vector<8x384xf32> -> vector<8x384xf32>
    %43 = arith.addf %39, %42 : vector<8x384xf32>
    %cst_12 = arith.constant 0.000000e+00 : f32
    %44 = vector.broadcast %cst_12 : f32 to vector<8x384xf32>
    %45 = arith.maximumf %43, %44 : vector<8x384xf32>
    %46 = arith.truncf %45 : vector<8x384xf32> to vector<8x384xbf16>
    %c0_13 = arith.constant 0 : index
    %c0_14 = arith.constant 0 : index
    %47 = vector.load %arg5[%c0_13, %c0_14] : memref<8x384xbf16, #tpu.memory_space<vmem>>, vector<8x384xbf16>
    tpu.vector_store %arg5[%c0_13, %c0_14], %46 {strides = array<i32>} : memref<8x384xbf16, #tpu.memory_space<vmem>>, vector<8x384xbf16>,
    return
  }
  func.func @transform_0(%arg0: i32, %arg1: i32) -> (i32, i32) {
    %c0_i32 = arith.constant 0 : i32
    %c0_i32_0 = arith.constant 0 : i32
    %c0_i32_1 = arith.constant 0 : i32
    return %c0_i32, %c0_i32_0 : i32, i32
  }
  func.func @transform_1(%arg0: i32, %arg1: i32) -> (i32, i32) {
    %c0_i32 = arith.constant 0 : i32
    %c0_i32_0 = arith.constant 0 : i32
    return %arg0, %c0_i32 : i32, i32
  }
  func.func @transform_2(%arg0: i32, %arg1: i32) -> (i32, i32) {
    %c0_i32 = arith.constant 0 : i32
    %c0_i32_0 = arith.constant 0 : i32
    return %arg0, %c0_i32 : i32, i32
  }
  func.func @transform_3(%arg0: i32, %arg1: i32) -> (i32, i32) {
    %c0_i32 = arith.constant 0 : i32
    return %arg0, %arg1 : i32, i32
  }
}

</mosaic_0001>

<bundles_post_ra>
// kernel: tpu_custom_call.1
= control target key start
LH: loop header
LB: loop body
LE: loop exit
PB: predicated region body
PF: predicated region fallthrough
CT: control target
= control target key end

     0   :  { %8 = vsyncpa [#allocation3], 0  ;;  %s1956_s0 = inlined_call_operand.hbm [shape: bf16[4,896], index: 0, kind: input, shape index: {}]   ;;  %s1957_s1 = inlined_call_operand.vmem [shape: bf16[8,36], index: 1, kind: input, shape index: {}]   ;;  %s1958_s2 = inlined_call_operand.vmem [shape: f32[8,1], index: 2, kind: input, shape index: {}]   ;;  %s1959_s3 = inlined_call_operand.hbm [shape: bf16[8,768], index: 3, kind: output, shape index: {}]  }
   0x1   :  { %9 = vsyncpa [#allocation4], 0 }
   0x2   :  { %11 = vsyncpa [#allocation4 + $0x1], 0  ;;  %s1716_s12 = smov 0   ;;  %s1718_s13 = smov 0  }
   0x3   :  { %s1720_s14 = smov 0   ;;  %s1722_s15 = smov 0  }
   0x4   :  { %s1724_s16 = smov 0   ;;  %s1726_s17 = smov 0  }
   0x5 LB: > { %s1361_s18 = sadd.s32 4294967295, %s1673_s17   ;;  %s1362_s19 = sadd.s32 4294967294, %s1673_s17   ;;  %s1673_s17 = sphi %s1726_s17, %s17_s17   ;;  %s1669_s16 = sphi %s1724_s16, %s1968_s16   ;;  %s1665_s15 = sphi %s1722_s15, %s1967_s15   ;;  %s1661_s14 = sphi %s1720_s14, %s1966_s14   ;;  %s1657_s13 = sphi %s1718_s13, %s1965_s13   ;;  %s1653_s12 = sphi %s1716_s12, %s1964_s12  }
   0x6   : > { %s26_s20 = sadd.s32 1, %s1669_s16  ;;  %s111_s21 = sadd.s32 1, %s1661_s14 }
   0x7   : > { %p27_p0 = scmp.ge.s32.totalorder %s26_s20, 2  ;;  %p121_p1 = scmp.ne.s32.totalorder %s1661_s14, %s1657_s13 }
   0x8   : > { %p122_p2 = scmp.eq.s32.totalorder %s1361_s18, 1  ;;  %p127_p3 = scmp.ne.s32.totalorder %s1657_s13, %s1653_s12 }
   0x9   : > { %s1970_s20 = smov (%p27_p0, %s26_s20), 0  ;;  %p128_p5 = scmp.eq.s32.totalorder %s1362_s19, 1 }
   0xa   : > { %p1756_p4 = por %p122_p2, %p121_p1  ;;  %s107_s23 = ssub.s32 %s1669_s16, %s1970_s20 }
   0xb   : > { %p1363_p6 = scmp.ge.s32.totalorder %s1673_s17, 1  ;;  %p109_p7 = scmp.eq.s32.totalorder %s107_s23, 0 }
   0xc   : > { %p1763_p8 = por %p128_p5, %p127_p3  ;;  %p135_p9 = scmp.lt.s32.totalorder %s1673_s17, 3 }
   0xd   : > { %s1769_s25 = scalar_select %p109_p7, %s1661_s14, %s111_s21  }
   0xe   : > { %p1771_p10 = pnand %p1363_p6, %p135_p9  ;;  %p1775_p11 = scmp.eq.s32.totalorder %s1361_s18, 0 }
   0xf   : > { %s1675_s28 = smov [#allocation2]  }
  0x10   : > { %p1485_p12 = pneg %p1771_p10  ;;  %s148_s29 = sshll.u32 %s1675_s28, 4  ;;  %s149_s29 = int_to_ptr.vmem [resolvable:$true] %s148_s29 }
  0x11   : > { %s1578_s30 = scalar_lea.vmem %s149_s29, 224  ;;  %p1586_p5 = scmp.lt.s32.totalorder %s149_s29, %s149_s29 }
  0x12   : > { %p1486_p13 = pnand %p1775_p11, %p1485_p12  ;;  %p1579_p1 = scmp.ne.s32.totalorder %s149_s29, %s1578_s30 }
  0x13   : > { %p1587_p6 = scmp.lt.s32.totalorder %s1578_s30, %s1578_s30 }
  0x14   : > { %p1569_p0 = pneg %p1486_p13 }
  0x15   : > { %p1588_p7 = por %p1587_p6, %p1586_p5 }
  0x16   : > { %p1581_p2 = pnand %p1579_p1, %p1569_p0 }
  0x18   : > { %p1582_p3 = pneg %p1581_p2 }
  0x1a   : > { %p1589_p9 = pnand %p1588_p7, %p1582_p3 }
  0x1c   : > { %1592 = shalt.err (!%p1589_p9)
}
  0x1d   : > { %1488 = dma.hbm_to_vmem [thread:$0]  (!%p1486_p13), %s1956_s0, 224, %s149_s29, [#allocation3]  }
  0x1e   : > { %175 = sbr.rel (%p1771_p10) target bundleno = 453 (0x1c5), region = 32 }
  0x23   : > { %1644 = dma.done.wait (%p1775_p11), [#allocation3], 224  }
  0x24   : > { %1646 = vsyncadd (%p1775_p11), [#allocation3], 4294967072  ;;  %s212_s6 = smul.u32 384, %s1665_s15  ;;  %v230_v0 = vlaneseq  ;;  %v1676_v1 = vmov 1983009808   ;;  %v1677_v4 = vmov 0  }
  0x25   : > { %v228_v2 = vunpack.c.l.s4 %v1676_v1  ;;  %288 = vmatprep.mubr.bf16.mxu0 %v1677_v4  ;;  %1564 = vset.pattern.permute.xlu0 %v1677_v4  ;;  %v1678_v6 = vmov 0.0   ;;  %vm1679_vm0 = vmmov 0   ;;  %v218_v9 = vld [vmem:[%s1957_s1] sm:$0xf]  ;;  %vm246_vm1 = vcmask 1041408   ;;  %s1680_s18 = smov 126  }
  0x26   : > { %s213_s7 = sshra.s32 %s212_s6, 7  ;;  %v231_v3 = vshrl.u32 %v230_v0, 7  ;;  %1424 = vmatprep.subr.bf16.mxu1 %v1678_v6  ;;  %1426 = vmatprep.mubr.msk.bf16.mxu1 %vm1679_vm0, %v1678_v6  ;;  %s1681_s19 = smov 127   ;;  %v1805_v12 = vcombine.low %v218_v9, %v218_v9  ;;  %vm242_vm2 = vcmask 31744   ;;  %v219_v18 = vld [vmem:[%s1958_s2] sm:$0xff]  ;;  %vm354_vm3 = vcmask 1039360  }
  0x27   : > { %s1369_s8 = sshll.u32 %s213_s7, 1  ;;  %v229_v5 = vunpack.c.0.s8 %v228_v2  ;;  %s1682_s21 = smov 124   ;;  %vm464_vm4 = vcmask 1031168   ;;  %vm574_vm5 = vcmask 900096   ;;  %vm684_vm6 = vcmask 891904  }
  0x28   : > { %s216_s9 = scalar_lea.vmem [#allocation2], %s1369_s8  ;;  %s1683_s23 = smov 120   ;;  %vm794_vm7 = vcmask 883712   ;;  %vm904_vm8 = vcmask 752640   ;;  %vm1014_vm9 = vcmask 744448   ;;  %vm1124_vm10 = vcmask 736256  }
  0x29   : > { %v232_v7 = vsub.s32 %v229_v5, %v231_v3  ;;  %v217_v8 = vld [vmem:[%s216_s9] sm:$0xff]  ;;  %s1684_s26 = smov 110   ;;  %s1685_s27 = smov 116  }
  0x2a   : > { %v226_v11 = vcombine.high %v217_v8, %v217_v8  ;;  %s1686_s28 = smov 109   ;;  %s1687_s29 = smov 112  }
  0x2b   : > { %v1801_v10 = vrot.slane %v217_v8, %v232_v7  ;;  %s1688_s30 = smov 108   ;;  %s1689_s4 = smov 92  }
  0x2c   : > { %v240_v13 = vrot.slane %v226_v11, %v232_v7  ;;  %s1690_s5 = smov 104   ;;  %s1691_s6 = smov 91  }
  0x2d   : > { %456 = vrot.lane.b32.xlu1 %v1801_v10, %s1680_s18  ;;  %346 = vrot.lane.b32.xlu0 %v1801_v10, %s1681_s19  ;;  %v241_v14 = vcombine.high %v1801_v10, %v1801_v10  ;;  %v248_v15 = vsel %vm246_vm1, %v1801_v10, 0  ;;  %s1692_s7 = smov 100   ;;  %s1693_s8 = smov 90  }
  0x2e   : > { %v254_v16 = vsel %vm246_vm1, %v240_v13, 0  ;;  %v345_v17 = vcombine.high %v240_v13, %v240_v13  ;;  %s1694_s9 = smov 96  }
  0x2f   : > { %1370 = vmatprep.subr.msk.bf16.mxu0 %vm246_vm1, %v241_v14  ;;  %1425 = vmatpush3.bf16.msra.mxu1 %v254_v16 }
  0x30   : > { %271 = vmatpush1.bf16.msra.mxu0 %v248_v15  ;;  %1430 = vmatprep.subr.bf16.mxu1 %v1678_v6 }
  0x31   : > { %343 = vrot.lane.b32.xlu0 %v1805_v12, %s1682_s21  ;;  %350 = vrot.lane.b32.xlu1 %v240_v13, %s1681_s19  ;;  %s1405_s21 = smul.u32 192, %s1665_s15 }
  0x32   : > { %1427 = vmatmul.mubr.msk.bf16.vlgmr.msra.gmra.mxu1 %vm242_vm2, %v218_v9 }
  0x33   : > { %1371 = vmatmul.mubr.msk.bf16.vlgmr.msra.gmra.mxu0 %vm242_vm2, %v218_v9  ;;  %1432 = vmatprep.mubr.msk.bf16.mxu1 %vm1679_vm0, %v1678_v6 }
  0x34   : > { %402 = vmatprep.mubr.bf16.mxu0 %v1677_v4 }
  0x35   : > { %348 = vrot.lane.b32.xlu0 %v241_v14, %s1681_s19  ;;  %460 = vrot.lane.b32.xlu1 %v240_v13, %s1680_s18 }
  0x39   : > { %458 = vrot.lane.b32.xlu0 %v241_v14, %s1680_s18  ;;  %352 = vrot.lane.b32.xlu1 %v345_v17, %s1681_s19 }
  0x3d   : > { %462 = vrot.lane.b32.xlu0 %v345_v17, %s1680_s18  ;;  %454 = vrot.lane.b32.xlu1 %v1805_v12, %s1683_s23  ;;  %s199_s18 = sand.u32 1, %s1657_s13  }
  0x3e   : > { %s1478_s19 = smul.u32 12, %s199_s18  ;;  %s1243_s15 = scalar_lea.sflag [#allocation4], %s199_s18 }
  0x40   : > { %s201_s23 = scalar_lea.vmem [#allocation5], %s1478_s19 }
  0x41   : > { %566 = vrot.lane.b32.xlu0 %v1801_v10, %s1684_s26  ;;  %568 = vrot.lane.b32.xlu1 %v241_v14, %s1684_s26 }
  0x45   : > { %570 = vrot.lane.b32.xlu0 %v240_v13, %s1684_s26  ;;  %572 = vrot.lane.b32.xlu1 %v345_v17, %s1684_s26  ;;  %s1259_s26 = sshll.u32 %s201_s23, 4  ;;  %s1260_s26 = int_to_ptr.vmem [resolvable:$true] %s1259_s26 }
  0x49   : > { %564 = vrot.lane.b32.xlu0 %v1805_v12, %s1685_s27  ;;  %676 = vrot.lane.b32.xlu1 %v1801_v10, %s1686_s28 }
  0x4d   : > { %678 = vrot.lane.b32.xlu0 %v241_v14, %s1686_s28  ;;  %680 = vrot.lane.b32.xlu1 %v240_v13, %s1686_s28 }
  0x51   : > { %682 = vrot.lane.b32.xlu0 %v345_v17, %s1686_s28  ;;  %674 = vrot.lane.b32.xlu1 %v1805_v12, %s1687_s29  ;;  %s1914_s29 = scalar_lea.hbm %s1959_s3, %s1405_s21 }
  0x55   : > { %786 = vrot.lane.b32.xlu0 %v1801_v10, %s1688_s30  ;;  %788 = vrot.lane.b32.xlu1 %v241_v14, %s1688_s30 }
  0x59   : > { %790 = vrot.lane.b32.xlu0 %v240_v13, %s1688_s30  ;;  %792 = vrot.lane.b32.xlu1 %v345_v17, %s1688_s30 }
  0x5d   : > { %784 = vrot.lane.b32.xlu0 %v1805_v12, %s1688_s30  ;;  %896 = vrot.lane.b32.xlu1 %v1801_v10, %s1689_s4  ;;  %s1593_s30 = scalar_lea.vmem %s1260_s26, 192 }
  0x5e   : > { %p1594_p10 = scmp.ne.s32.totalorder %s1260_s26, %s1593_s30 }
  0x60   : > { %p1595_p11 = pnand %p1594_p10, %p1756_p4 }
  0x61   : > { %898 = vrot.lane.b32.xlu0 %v241_v14, %s1689_s4  ;;  %900 = vrot.lane.b32.xlu1 %v240_v13, %s1689_s4 }
  0x62   : > { %p1596_p12 = pneg %p1595_p11 }
  0x65   : > { %902 = vrot.lane.b32.xlu0 %v345_v17, %s1689_s4  ;;  %894 = vrot.lane.b32.xlu1 %v1805_v12, %s1690_s5  ;;  %s1695_s4 = smov [#allocation5]  }
  0x66   : > { %s1597_s5 = sshll.u32 %s1695_s4, 4  ;;  %s1598_s5 = int_to_ptr.vmem [resolvable:$false] %s1597_s5 }
  0x67   : > { %p1600_p13 = scmp.lt.s32.totalorder %s1260_s26, %s1598_s5 }
  0x69   : > { %1006 = vrot.lane.b32.xlu0 %v1801_v10, %s1691_s6  ;;  %1008 = vrot.lane.b32.xlu1 %v241_v14, %s1691_s6 }
  0x6d   : > { %1010 = vrot.lane.b32.xlu0 %v240_v13, %s1691_s6  ;;  %1012 = vrot.lane.b32.xlu1 %v345_v17, %s1691_s6  ;;  %s1599_s6 = scalar_lea.vmem %s1598_s5, 384 }
  0x6e   : > { %p1601_p0 = scmp.lt.s32.totalorder %s1599_s6, %s1593_s30 }
  0x70   : > { %p1602_p1 = por %p1601_p0, %p1600_p13 }
  0x71   : > { %1004 = vrot.lane.b32.xlu0 %v1805_v12, %s1692_s7  ;;  %1116 = vrot.lane.b32.xlu1 %v1801_v10, %s1693_s8 }
  0x72   : > { %p1603_p2 = pnand %p1602_p1, %p1596_p12 }
  0x75   : > { %1118 = vrot.lane.b32.xlu0 %v241_v14, %s1693_s8  ;;  %1120 = vrot.lane.b32.xlu1 %v240_v13, %s1693_s8 }
  0x79   : > { %1122 = vrot.lane.b32.xlu0 %v345_v17, %s1693_s8  ;;  %1114 = vrot.lane.b32.xlu1 %v1805_v12, %s1694_s9 }
  0x7d   : > { %222 = vperm.xlu0 %1564, %v219_v18  }
  0x9f   : > { %v457_v19 = vpop.permute.xlu1 %456  ;;  %v347_v20 = vpop.permute.xlu0 %346 }
  0xa3   : > { %v344_v21 = vpop.permute.xlu0 %343  ;;  %v351_v22 = vpop.permute.xlu1 %350 }
  0xa7   : > { %v349_v23 = vpop.permute.xlu0 %348  ;;  %v461_v24 = vpop.permute.xlu1 %460 }
  0xa8   : > { %v355_v25 = vsel %vm354_vm3, %v347_v20, %v349_v23  ;;  %v356_v26 = vsel %vm354_vm3, %v349_v23, %v351_v22 }
  0xa9   : > { %v362_v27 = vsel %vm246_vm1, %v355_v25, 0  ;;  %1374 = vmatprep.subr.msk.bf16.mxu0 %vm246_vm1, %v356_v26 }
  0xaa   : > { %385 = vmatpush1.bf16.msra.mxu0 %v362_v27 }
  0xab   : > { %v459_v28 = vpop.permute.xlu0 %458  ;;  %v353_v29 = vpop.permute.xlu1 %352 }
  0xac   : > { %v465_v30 = vsel %vm464_vm4, %v457_v19, %v459_v28  ;;  %v466_v31 = vsel %vm464_vm4, %v459_v28, %v461_v24  ;;  %v357_v32 = vsel %vm354_vm3, %v351_v22, %v353_v29 }
  0xad   : > { %v472_v33 = vsel %vm246_vm1, %v465_v30, 0  ;;  %v368_v34 = vsel %vm246_vm1, %v357_v32, 0  ;;  %1375 = vmatmul.mubr.msk.bf16.vlgmr.msra.gmra.mxu0 %vm242_vm2, %v344_v21  ;;  %1377 = vmatprep.subr.msk.bf16.mxu0 %vm246_vm1, %v466_v31 }
  0xae   : > { %1431 = vmatpush3.bf16.msra.mxu1 %v368_v34  ;;  %495 = vmatpush1.bf16.msra.mxu0 %v472_v33 }
  0xaf   : > { %v463_v35 = vpop.permute.xlu0 %462  ;;  %v455_v36 = vpop.permute.xlu1 %454  ;;  %1436 = vmatprep.subr.bf16.mxu1 %v1678_v6  ;;  %512 = vmatprep.mubr.bf16.mxu0 %v1677_v4 }
  0xb0   : > { %v467_v37 = vsel %vm464_vm4, %v461_v24, %v463_v35 }
  0xb1   : > { %v478_v38 = vsel %vm246_vm1, %v467_v37, 0  ;;  %1433 = vmatmul.mubr.msk.bf16.vlgmr.msra.gmra.mxu1 %vm242_vm2, %v344_v21 }
  0xb2   : > { %1437 = vmatpush3.bf16.msra.mxu1 %v478_v38  ;;  %1438 = vmatprep.mubr.msk.bf16.mxu1 %vm1679_vm0, %v1678_v6 }
  0xb3   : > { %v567_v39 = vpop.permute.xlu0 %566  ;;  %v569_v40 = vpop.permute.xlu1 %568  ;;  %1442 = vmatprep.subr.bf16.mxu1 %v1678_v6 }
  0xb4   : > { %v575_v41 = vsel %vm574_vm5, %v567_v39, %v569_v40 }
  0xb5   : > { %1378 = vmatmul.mubr.msk.bf16.vlgmr.msra.gmra.mxu0 %vm242_vm2, %v455_v36  ;;  %v582_v46 = vsel %vm246_vm1, %v575_v41, 0 }
  0xb6   : > { %622 = vmatprep.mubr.bf16.mxu0 %v1677_v4 }
  0xb7   : > { %v571_v42 = vpop.permute.xlu0 %570  ;;  %v573_v43 = vpop.permute.xlu1 %572 }
  0xb8   : > { %v576_v44 = vsel %vm574_vm5, %v569_v40, %v571_v42  ;;  %v577_v45 = vsel %vm574_vm5, %v571_v42, %v573_v43 }
  0xb9   : > { %v588_v47 = vsel %vm246_vm1, %v577_v45, 0  ;;  %1439 = vmatmul.mubr.msk.bf16.vlgmr.msra.gmra.mxu1 %vm242_vm2, %v455_v36  ;;  %1380 = vmatprep.subr.msk.bf16.mxu0 %vm246_vm1, %v576_v44 }
  0xba   : > { %605 = vmatpush1.bf16.msra.mxu0 %v582_v46  ;;  %1443 = vmatpush3.bf16.msra.mxu1 %v588_v47 }
  0xbb   : > { %v565_v48 = vpop.permute.xlu0 %564  ;;  %v677_v49 = vpop.permute.xlu1 %676  ;;  %1444 = vmatprep.mubr.msk.bf16.mxu1 %vm1679_vm0, %v1678_v6  ;;  %1448 = vmatprep.subr.bf16.mxu1 %v1678_v6 }
  0xbd   : > { %1381 = vmatmul.mubr.msk.bf16.vlgmr.msra.gmra.mxu0 %vm242_vm2, %v565_v48 }
  0xbe   : > { %732 = vmatprep.mubr.bf16.mxu0 %v1677_v4 }
  0xbf   : > { %v679_v50 = vpop.permute.xlu0 %678  ;;  %v681_v51 = vpop.permute.xlu1 %680 }
  0xc0   : > { %v685_v52 = vsel %vm684_vm6, %v677_v49, %v679_v50  ;;  %v686_v53 = vsel %vm684_vm6, %v679_v50, %v681_v51 }
  0xc1   : > { %v692_v54 = vsel %vm246_vm1, %v685_v52, 0  ;;  %1445 = vmatmul.mubr.msk.bf16.vlgmr.msra.gmra.mxu1 %vm242_vm2, %v565_v48  ;;  %1383 = vmatprep.subr.msk.bf16.mxu0 %vm246_vm1, %v686_v53 }
  0xc2   : > { %715 = vmatpush1.bf16.msra.mxu0 %v692_v54  ;;  %1450 = vmatprep.mubr.msk.bf16.mxu1 %vm1679_vm0, %v1678_v6 }
  0xc3   : > { %v683_v55 = vpop.permute.xlu0 %682  ;;  %v675_v56 = vpop.permute.xlu1 %674 }
  0xc4   : > { %v687_v57 = vsel %vm684_vm6, %v681_v51, %v683_v55 }
  0xc5   : > { %v698_v58 = vsel %vm246_vm1, %v687_v57, 0  ;;  %1384 = vmatmul.mubr.msk.bf16.vlgmr.msra.gmra.mxu0 %vm242_vm2, %v675_v56 }
  0xc6   : > { %1449 = vmatpush3.bf16.msra.mxu1 %v698_v58  ;;  %842 = vmatprep.mubr.bf16.mxu0 %v1677_v4 }
  0xc7   : > { %v787_v59 = vpop.permute.xlu0 %786  ;;  %v789_v60 = vpop.permute.xlu1 %788  ;;  %1454 = vmatprep.subr.bf16.mxu1 %v1678_v6 }
  0xc8   : > { %v795_v61 = vsel %vm794_vm7, %v787_v59, %v789_v60 }
  0xc9   : > { %1451 = vmatmul.mubr.msk.bf16.vlgmr.msra.gmra.mxu1 %vm242_vm2, %v675_v56  ;;  %v802_v2 = vsel %vm246_vm1, %v795_v61, 0 }
  0xca   : > { %1456 = vmatprep.mubr.msk.bf16.mxu1 %vm1679_vm0, %v1678_v6 }
  0xcb   : > { %v791_v62 = vpop.permute.xlu0 %790  ;;  %v793_v63 = vpop.permute.xlu1 %792 }
  0xcc   : > { %v796_v0 = vsel %vm794_vm7, %v789_v60, %v791_v62  ;;  %v797_v1 = vsel %vm794_vm7, %v791_v62, %v793_v63 }
  0xcd   : > { %v808_v3 = vsel %vm246_vm1, %v797_v1, 0  ;;  %1386 = vmatprep.subr.msk.bf16.mxu0 %vm246_vm1, %v796_v0 }
  0xce   : > { %825 = vmatpush1.bf16.msra.mxu0 %v802_v2  ;;  %1455 = vmatpush3.bf16.msra.mxu1 %v808_v3 }
  0xcf   : > { %v785_v5 = vpop.permute.xlu0 %784  ;;  %v897_v7 = vpop.permute.xlu1 %896  ;;  %1460 = vmatprep.subr.bf16.mxu1 %v1678_v6 }
  0xd1   : > { %1387 = vmatmul.mubr.msk.bf16.vlgmr.msra.gmra.mxu0 %vm242_vm2, %v785_v5  ;;  %1457 = vmatmul.mubr.msk.bf16.vlgmr.msra.gmra.mxu1 %vm242_vm2, %v785_v5 }
  0xd2   : > { %952 = vmatprep.mubr.bf16.mxu0 %v1677_v4  ;;  %1462 = vmatprep.mubr.msk.bf16.mxu1 %vm1679_vm0, %v1678_v6 }
  0xd3   : > { %v899_v8 = vpop.permute.xlu0 %898  ;;  %v901_v9 = vpop.permute.xlu1 %900 }
  0xd4   : > { %v905_v10 = vsel %vm904_vm8, %v897_v7, %v899_v8  ;;  %v906_v11 = vsel %vm904_vm8, %v899_v8, %v901_v9 }
  0xd5   : > { %v912_v12 = vsel %vm246_vm1, %v905_v10, 0  ;;  %1389 = vmatprep.subr.msk.bf16.mxu0 %vm246_vm1, %v906_v11 }
  0xd6   : > { %935 = vmatpush1.bf16.msra.mxu0 %v912_v12 }
  0xd7   : > { %v903_v13 = vpop.permute.xlu0 %902  ;;  %v895_v14 = vpop.permute.xlu1 %894 }
  0xd8   : > { %v907_v15 = vsel %vm904_vm8, %v901_v9, %v903_v13 }
  0xd9   : > { %v918_v16 = vsel %vm246_vm1, %v907_v15, 0  ;;  %1390 = vmatmul.mubr.msk.bf16.vlgmr.msra.gmra.mxu0 %vm242_vm2, %v895_v14 }
  0xda   : > { %1461 = vmatpush3.bf16.msra.mxu1 %v918_v16  ;;  %1062 = vmatprep.mubr.bf16.mxu0 %v1677_v4 }
  0xdb   : > { %v1007_v17 = vpop.permute.xlu0 %1006  ;;  %v1009_v18 = vpop.permute.xlu1 %1008  ;;  %1466 = vmatprep.subr.bf16.mxu1 %v1678_v6 }
  0xdc   : > { %v1015_v19 = vsel %vm1014_vm9, %v1007_v17, %v1009_v18 }
  0xdd   : > { %1463 = vmatmul.mubr.msk.bf16.vlgmr.msra.gmra.mxu1 %vm242_vm2, %v895_v14  ;;  %v1022_v24 = vsel %vm246_vm1, %v1015_v19, 0 }
  0xde   : > { %1468 = vmatprep.mubr.msk.bf16.mxu1 %vm1679_vm0, %v1678_v6 }
  0xdf   : > { %v1011_v20 = vpop.permute.xlu0 %1010  ;;  %v1013_v21 = vpop.permute.xlu1 %1012 }
  0xe0   : > { %v1016_v22 = vsel %vm1014_vm9, %v1009_v18, %v1011_v20  ;;  %v1017_v23 = vsel %vm1014_vm9, %v1011_v20, %v1013_v21 }
  0xe1   : > { %v1028_v25 = vsel %vm246_vm1, %v1017_v23, 0  ;;  %1392 = vmatprep.subr.msk.bf16.mxu0 %vm246_vm1, %v1016_v22 }
  0xe2   : > { %1045 = vmatpush1.bf16.msra.mxu0 %v1022_v24  ;;  %1467 = vmatpush3.bf16.msra.mxu1 %v1028_v25 }
  0xe3   : > { %v1005_v26 = vpop.permute.xlu0 %1004  ;;  %v1117_v27 = vpop.permute.xlu1 %1116  ;;  %1472 = vmatprep.subr.bf16.mxu1 %v1678_v6 }
  0xe5   : > { %1393 = vmatmul.mubr.msk.bf16.vlgmr.msra.gmra.mxu0 %vm242_vm2, %v1005_v26  ;;  %1469 = vmatmul.mubr.msk.bf16.vlgmr.msra.gmra.mxu1 %vm242_vm2, %v1005_v26 }
  0xe6   : > { %1172 = vmatprep.mubr.bf16.mxu0 %v1677_v4  ;;  %1474 = vmatprep.mubr.msk.bf16.mxu1 %vm1679_vm0, %v1678_v6 }
  0xe7   : > { %v1119_v28 = vpop.permute.xlu0 %1118  ;;  %v1121_v29 = vpop.permute.xlu1 %1120 }
  0xe8   : > { %v1125_v30 = vsel %vm1124_vm10, %v1117_v27, %v1119_v28  ;;  %v1126_v31 = vsel %vm1124_vm10, %v1119_v28, %v1121_v29 }
  0xe9   : > { %v1132_v32 = vsel %vm246_vm1, %v1125_v30, 0  ;;  %1395 = vmatprep.subr.msk.bf16.mxu0 %vm246_vm1, %v1126_v31 }
  0xea   : > { %1155 = vmatpush1.bf16.msra.mxu0 %v1132_v32 }
  0xeb   : > { %v1123_v33 = vpop.permute.xlu0 %1122  ;;  %v1115_v34 = vpop.permute.xlu1 %1114 }
  0xec   : > { %v1127_v35 = vsel %vm1124_vm10, %v1121_v29, %v1123_v33 }
  0xed   : > { %v1138_v36 = vsel %vm246_vm1, %v1127_v35, 0  ;;  %1396 = vmatmul.mubr.msk.bf16.vlgmr.msra.gmra.mxu0 %vm242_vm2, %v1115_v34 }
  0xee   : > { %1473 = vmatpush3.bf16.msra.mxu1 %v1138_v36 }
  0xf1   : > { %1475 = vmatmul.mubr.msk.bf16.vlgmr.msra.gmra.mxu1 %vm242_vm2, %v1115_v34 }
  0xf2   : > { %v331_v6 = vpop.f32.mrf.mxu1 }
  0xf3   : > { %v290_v4 = vpop.f32.mrf.mxu0 }
  0xf4   : > { %v1428_v38 = vpop.f32.mrf.mxu1 }
  0xf5   : > { %v292_v37 = vpop.f32.mrf.mxu0 }
  0xf6   : > { %v334_v40 = vpop.f32.mrf.mxu1 }
  0xf7   : > { %v294_v39 = vpop.f32.mrf.mxu0 }
  0xf8   : > { %v1429_v42 = vpop.f32.mrf.mxu1  ;;  %v223_v21 = vpop.permute.xlu0 %222 }
  0xf9   : > { %v295_v41 = vpop.f32.mrf.mxu0  ;;  %v337_v24 = vadd.f32 %v290_v4, %v223_v21  ;;  %v338_v27 = vadd.f32 %v292_v37, %v223_v21  ;;  %v339_v30 = vadd.f32 %v331_v6, %v223_v21 }
 0x16d   : > { %v404_v43 = vpop.f32.mrf.mxu0 }
 0x16e   : > { %v451_v31 = vadd.f32 %v404_v43, %v337_v24 }
 0x16f   : > { %v406_v44 = vpop.f32.mrf.mxu0 }
 0x170   : > { %v452_v33 = vadd.f32 %v406_v44, %v338_v27 }
 0x171   : > { %v408_v45 = vpop.f32.mrf.mxu0  ;;  %v445_v46 = vpop.f32.mrf.mxu1 }
 0x172   : > { %v453_v36 = vadd.f32 %v445_v46, %v339_v30 }
 0x173   : > { %v409_v47 = vpop.f32.mrf.mxu0  ;;  %v1434_v48 = vpop.f32.mrf.mxu1 }
 0x175   : > { %v448_v49 = vpop.f32.mrf.mxu1  ;;  %v514_v50 = vpop.f32.mrf.mxu0 }
 0x176   : > { %v561_v34 = vadd.f32 %v514_v50, %v451_v31 }
 0x177   : > { %v1435_v51 = vpop.f32.mrf.mxu1  ;;  %v516_v52 = vpop.f32.mrf.mxu0 }
 0x178   : > { %v562_v38 = vadd.f32 %v516_v52, %v452_v33 }
 0x179   : > { %v518_v53 = vpop.f32.mrf.mxu0  ;;  %v555_v54 = vpop.f32.mrf.mxu1 }
 0x17a   : > { %v563_v42 = vadd.f32 %v555_v54, %v453_v36 }
 0x17b   : > { %v519_v55 = vpop.f32.mrf.mxu0  ;;  %v1440_v56 = vpop.f32.mrf.mxu1 }
 0x17d   : > { %v558_v57 = vpop.f32.mrf.mxu1  ;;  %v624_v58 = vpop.f32.mrf.mxu0 }
 0x17e   : > { %v671_v39 = vadd.f32 %v624_v58, %v561_v34 }
 0x17f   : > { %v1441_v59 = vpop.f32.mrf.mxu1  ;;  %v626_v60 = vpop.f32.mrf.mxu0 }
 0x180   : > { %v672_v45 = vadd.f32 %v626_v60, %v562_v38 }
 0x181   : > { %v628_v61 = vpop.f32.mrf.mxu0  ;;  %v665_v62 = vpop.f32.mrf.mxu1 }
 0x182   : > { %v673_v48 = vadd.f32 %v665_v62, %v563_v42 }
 0x183   : > { %v629_v63 = vpop.f32.mrf.mxu0  ;;  %v1446_v0 = vpop.f32.mrf.mxu1 }
 0x185   : > { %v668_v1 = vpop.f32.mrf.mxu1  ;;  %v734_v2 = vpop.f32.mrf.mxu0 }
 0x186   : > { %v781_v4 = vadd.f32 %v734_v2, %v671_v39 }
 0x187   : > { %v1447_v3 = vpop.f32.mrf.mxu1  ;;  %v736_v5 = vpop.f32.mrf.mxu0 }
 0x188   : > { %v782_v49 = vadd.f32 %v736_v5, %v672_v45 }
 0x189   : > { %v738_v7 = vpop.f32.mrf.mxu0  ;;  %v775_v8 = vpop.f32.mrf.mxu1 }
 0x18a   : > { %v783_v44 = vadd.f32 %v775_v8, %v673_v48 }
 0x18b   : > { %v739_v9 = vpop.f32.mrf.mxu0  ;;  %v1452_v10 = vpop.f32.mrf.mxu1 }
 0x18d   : > { %v778_v11 = vpop.f32.mrf.mxu1 }
 0x18f   : > { %v1453_v12 = vpop.f32.mrf.mxu1 }
 0x191   : > { %v844_v13 = vpop.f32.mrf.mxu0  ;;  %v885_v14 = vpop.f32.mrf.mxu1 }
 0x192   : > { %v891_v6 = vadd.f32 %v844_v13, %v781_v4  ;;  %v893_v55 = vadd.f32 %v885_v14, %v783_v44 }
 0x193   : > { %v846_v15 = vpop.f32.mrf.mxu0  ;;  %v1458_v16 = vpop.f32.mrf.mxu1 }
 0x194   : > { %v892_v50 = vadd.f32 %v846_v15, %v782_v49 }
 0x195   : > { %v848_v17 = vpop.f32.mrf.mxu0  ;;  %v888_v18 = vpop.f32.mrf.mxu1 }
 0x197   : > { %v849_v19 = vpop.f32.mrf.mxu0  ;;  %v1459_v20 = vpop.f32.mrf.mxu1 }
 0x199   : > { %v954_v22 = vpop.f32.mrf.mxu0 }
 0x19a   : > { %v1001_v53 = vadd.f32 %v954_v22, %v891_v6 }
 0x19b   : > { %v956_v23 = vpop.f32.mrf.mxu0 }
 0x19c   : > { %v1002_v56 = vadd.f32 %v956_v23, %v892_v50 }
 0x19d   : > { %v958_v25 = vpop.f32.mrf.mxu0  ;;  %v995_v26 = vpop.f32.mrf.mxu1 }
 0x19e   : > { %v1003_v58 = vadd.f32 %v995_v26, %v893_v55 }
 0x19f   : > { %v959_v28 = vpop.f32.mrf.mxu0  ;;  %v1464_v29 = vpop.f32.mrf.mxu1 }
 0x1a1   : > { %v998_v32 = vpop.f32.mrf.mxu1 }
 0x1a3   : > { %v1465_v35 = vpop.f32.mrf.mxu1 }
 0x1a5   : > { %v1064_v40 = vpop.f32.mrf.mxu0  ;;  %v1105_v41 = vpop.f32.mrf.mxu1 }
 0x1a6   : > { %v1111_v54 = vadd.f32 %v1064_v40, %v1001_v53  ;;  %v1113_v62 = vadd.f32 %v1105_v41, %v1003_v58 }
 0x1a7   : > { %v1066_v47 = vpop.f32.mrf.mxu0  ;;  %v1470_v37 = vpop.f32.mrf.mxu1 }
 0x1a8   : > { %v1112_v59 = vadd.f32 %v1066_v47, %v1002_v56 }
 0x1a9   : > { %v1068_v43 = vpop.f32.mrf.mxu0  ;;  %v1108_v51 = vpop.f32.mrf.mxu1 }
 0x1ab   : > { %v1069_v46 = vpop.f32.mrf.mxu0  ;;  %v1471_v52 = vpop.f32.mrf.mxu1 }
 0x1ad   : > { %v1174_v57 = vpop.f32.mrf.mxu0 }
 0x1ae   : > { %v1221_v60 = vadd.f32 %v1174_v57, %v1111_v54 }
 0x1af   : > { %v1176_v61 = vpop.f32.mrf.mxu0 }
 0x1b0   : > { %v1222_v63 = vadd.f32 %v1176_v61, %v1112_v59  ;;  %v1224_v2 = vmax.f32 %v1221_v60, 0.0 }
 0x1b1   : > { %v1215_v0 = vpop.f32.mrf.mxu1  ;;  %v1178_v1 = vpop.f32.mrf.mxu0 }
 0x1b2   : > { %v1225_v3 = vmax.f32 %v1222_v63, 0.0  ;;  %v1223_v5 = vadd.f32 %v1215_v0, %v1113_v62 }
 0x1b3   : > { %v1476_v7 = vpop.f32.mrf.mxu1  ;;  %v1179_v8 = vpop.f32.mrf.mxu0 }
 0x1b4   : > { %v1403_v9 = vpack.c.bf16 %v1225_v3, %v1224_v2  ;;  %v1226_v10 = vmax.f32 %v1223_v5, 0.0 }
 0x1b5   : > { %v1218_v11 = vpop.f32.mrf.mxu1 }
 0x1b6   : > { %1240 = vst [vmem:[%s201_s23] sm:$0xff] %v1403_v9  ;;  %v1404_v12 = vpack.c.bf16 %v1226_v10, %v1226_v10 }
 0x1b7   : > { %v1477_v13 = vpop.f32.mrf.mxu1 }
 0x1b8   : > { %1241 = vst [vmem:[%s201_s23 + $0x8] sm:$0xf] %v1404_v12 }
 0x1b9   : > { %1606 = shalt.err (!%p1603_p2)
}
 0x1ba   : > { %s1607_s7 = scalar_lea.hbm %s1914_s29, 192  ;;  %s1611_s10 = scalar_lea.hbm %s1959_s3, 384 }
 0x1bb   : > { %p1608_p3 = scmp.ne.s32.totalorder %s1914_s29, %s1607_s7  ;;  %p1612_p7 = scmp.lt.s32.totalorder %s1914_s29, %s1959_s3 }
 0x1bc   : > { %p1613_p9 = scmp.lt.s32.totalorder %s1611_s10, %s1607_s7 }
 0x1bd   : > { %p1609_p5 = pnand %p1608_p3, %p1756_p4 }
 0x1be   : > { %p1614_p10 = por %p1613_p9, %p1612_p7 }
 0x1bf   : > { %p1610_p6 = pneg %p1609_p5 }
 0x1c1   : > { %p1615_p11 = pnand %p1614_p10, %p1610_p6 }
 0x1c3   : > { %1618 = shalt.err (!%p1615_p11)
}
 0x1c4   : > { %1483 = dma.vmem_to_hbm [thread:$0]  (%p1756_p4), %s1260_s26, 192, %s1914_s29, %s1243_s15  }
 0x1c5 PF: > { %p1495_p12 = scmp.ge.s32.totalorder %s1673_s17, 2  ;;  %s1271_s19 = sand.u32 1, %s1653_s12  }
 0x1c6   : > { %s1272_s21 = scalar_lea.sflag [#allocation4], %s1271_s19 }
 0x1c7   : > { %p1490_p13 = pnand %p1495_p12, %p1763_p8 }
 0x1c9   : > { %p1491_p0 = pneg %p1490_p13 }
 0x1cb   : > { %1648 = dma.done.wait (%p1491_p0), %s1272_s21, 192  }
 0x1cc   : > { %1650 = vsyncadd (%p1491_p0), %s1272_s21, 4294967104  ;;  %s17_s17 = sadd.s32 1, %s1673_s17   ;;  %s1964_s12 = smov %s1657_s13 }
 0x1cd   : > { %p14_p1 = scmp.ge.s32.totalorder %s17_s17, 4   ;;  %s1965_s13 = smov %s1661_s14 }
 0x1ce   : > { %s1966_s14 = smov %s1769_s25  ;;  %s1967_s15 = smov %s1669_s16 }
 0x1cf   : > { %s1968_s16 = smov %s1970_s20  ;;  %16 = sbr.rel (!%p14_p1) target bundleno = 5 (0x5), region = 76 }
 0x1d4   :  { %1277 = vsyncpa [#allocation3], 1 }
 0x1d5   :  { %1279 = vsyncpa [#allocation3 + $0x1], 1 }
 0x1d6   :  { %1280 = vsyncpa [#allocation4], 1 }
 0x1d7   :  { %1282 = vsyncpa [#allocation4 + $0x1], 1 }

</bundles_post_ra>
